<compile_context>
chip_gen: v6e
topology: v6e:2x2x1
jax: 0.10.0
libtpu: 0.0.40
codegen_flags: <defaults>
</compile_context>

<pallas_src>
import jax
import jax.numpy as jnp
from jax.experimental import pallas as pl
from jax.experimental.pallas import tpu as pltpu


def _fused_multi_linear_kernel(x_ref, w_ref, b_ref, o_ref):
    # x_ref: (B, IN); w_ref: (IN, OUT_pad)  [MXU-canonical (K, N)];
    # b_ref: (1, OUT_pad); o_ref: (B, OUT_pad).
    acc = jnp.dot(x_ref[...], w_ref[...], preferred_element_type=jnp.float32)
    o_ref[...] = (acc + b_ref[...]).astype(o_ref.dtype)


def fuse_linear_params(weights, biases):
    """One-time parameter fusion (run at init, NOT per call).

    weights[i]: (OUT_i, IN) in PyTorch layout; biases[i]: (OUT_i,).
    Returns wcat: (IN, OUT_pad), bcat: (1, OUT_pad), out_fs, out_total.
    """
    out_fs = [int(w.shape[0]) for w in weights]
    out_total = sum(out_fs)
    out_pad = int(pl.cdiv(out_total, 128) * 128)  # lane-dense output width

    # Transpose each W_i once to (IN, OUT_i), concat along OUT, pad lanes.
    wcat = jnp.concatenate([w.T for w in weights], axis=1)   # (IN, out_total)
    bcat = jnp.concatenate(biases, axis=0)                   # (out_total,)
    pad = out_pad - out_total
    if pad:
        wcat = jnp.pad(wcat, ((0, 0), (0, pad)))
        bcat = jnp.pad(bcat, ((0, pad),))
    bcat = bcat.reshape(1, out_pad)
    return wcat, bcat, out_fs, out_total


def multiple_linear_fused(x, wcat, bcat, out_fs, out_total):
    """Hot path: x (B, IN), pre-fused wcat (IN, OUT_pad), bcat (1, OUT_pad)."""
    B, IN = x.shape
    out_pad = wcat.shape[1]

    itemsize = jnp.dtype(x.dtype).itemsize
    cost = pl.CostEstimate(
        flops=2 * B * IN * out_total,      # useful FLOPs only
        transcendentals=0,
        bytes_accessed=(x.size + wcat.size + bcat.size + B * out_pad) * itemsize,
    )

    vmem = pl.BlockSpec(memory_space=pltpu.MemorySpace.VMEM)
    out = pl.pallas_call(
        _fused_multi_linear_kernel,
        out_shape=jax.ShapeDtypeStruct((B, out_pad), x.dtype),
        in_specs=[vmem, vmem, vmem],
        out_specs=vmem,
        cost_estimate=cost,
    )(x, wcat, bcat)

    # Static slices to recover the three PyTorch outputs (skippable if the
    # consumer accepts the fused lane-dense slab).
    o0 = out[:, : out_fs[0]]
    o1 = out[:, out_fs[0] : out_fs[0] + out_fs[1]]
    o2 = out[:, out_fs[0] + out_fs[1] : out_total]
    return o0, o1, o2


def _init_linear_params(key, out_f, in_f, dtype):
    # Deterministic uniform(-k, k), k = 1/sqrt(in_f) (test-harness init;
    # torch default kaiming_uniform differs but only affects test values).
    k = 1.0 / jnp.sqrt(jnp.asarray(in_f, jnp.float32))
    kw, kb = jax.random.split(key)
    w = jax.random.uniform(kw, (out_f, in_f), dtype=jnp.float32, minval=-1.0, maxval=1.0) * k
    b = jax.random.uniform(kb, (out_f,), dtype=jnp.float32, minval=-1.0, maxval=1.0) * k
    return w.astype(dtype), b.astype(dtype)


if __name__ == "__main__":
    # MultipleLinear(out_fs=[32, 64, 16], in_fs=[32, 32, 32], bias=True, float32)
    # (all three linears consume the same x, so in_fs must be equal)
    B, IN = 8, 32
    out_fs_spec = [32, 64, 16]
    dtype = jnp.float32

    key = jax.random.PRNGKey(0)
    kx, k0, k1, k2 = jax.random.split(key, 4)
    x = jax.random.normal(kx, (B, IN), dtype=dtype)

    w0, b0 = _init_linear_params(k0, out_fs_spec[0], IN, dtype)
    w1, b1 = _init_linear_params(k1, out_fs_spec[1], IN, dtype)
    w2, b2 = _init_linear_params(k2, out_fs_spec[2], IN, dtype)

    # One-time parameter fusion (hoisted off the hot path).
    wcat, bcat, out_fs, out_total = fuse_linear_params((w0, w1, w2), (b0, b1, b2))
    jax.block_until_ready((wcat, bcat))

    out0, out1, out2 = multiple_linear_fused(x, wcat, bcat, out_fs, out_total)
    jax.block_until_ready((out0, out1, out2))

    # Correctness check against plain-JAX reference of torch.nn.Linear semantics.
    ref0 = x @ w0.T + b0
    ref1 = x @ w1.T + b1
    ref2 = x @ w2.T + b2
    assert out0.shape == (B, out_fs[0])
    assert out1.shape == (B, out_fs[1])
    assert out2.shape == (B, out_fs[2])
    assert jnp.allclose(out0, ref0, atol=1e-5, rtol=1e-5)
    assert jnp.allclose(out1, ref1, atol=1e-5, rtol=1e-5)
    assert jnp.allclose(out2, ref2, atol=1e-5, rtol=1e-5)

    print("KERNEL_OK")
</pallas_src>

<mosaic_0001>
module attributes {stable_mosaic.version = 11 : i64} {
  func.func @_fused_multi_linear_kernel(%arg0: memref<8x32xf32, #tpu.memory_space<vmem>>, %arg1: memref<32x128xf32, #tpu.memory_space<vmem>>, %arg2: memref<1x128xf32, #tpu.memory_space<vmem>>, %arg3: memref<8x128xf32, #tpu.memory_space<vmem>>) attributes {dimension_semantics = [], scalar_prefetch = 0 : i64, scratch_operands = 0 : i64, tpu.core_type = #tpu.core_type<tc>} {
    %c0 = arith.constant 0 : index
    %c0_0 = arith.constant 0 : index
    %0 = vector.load %arg0[%c0, %c0_0] : memref<8x32xf32, #tpu.memory_space<vmem>>, vector<8x32xf32>
    %c0_1 = arith.constant 0 : index
    %c0_2 = arith.constant 0 : index
    %1 = vector.load %arg1[%c0_1, %c0_2] : memref<32x128xf32, #tpu.memory_space<vmem>>, vector<32x128xf32>
    %cst = arith.constant dense<0.000000e+00> : vector<8x128xf32>
    %2 = tpu.matmul %0, %1, %cst {dimension_numbers = #tpu.dot_dimension_numbers<[1], [0], [0], [1], [0, 0, 1, 1], [], []>} : vector<8x32xf32>, vector<32x128xf32>, vector<8x128xf32> -> vector<8x128xf32>
    %c0_3 = arith.constant 0 : index
    %c0_4 = arith.constant 0 : index
    %3 = vector.load %arg2[%c0_3, %c0_4] : memref<1x128xf32, #tpu.memory_space<vmem>>, vector<1x128xf32>
    %4 = vector.broadcast %3 : vector<1x128xf32> to vector<8x128xf32>
    %5 = arith.addf %2, %4 : vector<8x128xf32>
    %c0_5 = arith.constant 0 : index
    %c0_6 = arith.constant 0 : index
    %6 = vector.load %arg3[%c0_5, %c0_6] : memref<8x128xf32, #tpu.memory_space<vmem>>, vector<8x128xf32>
    tpu.vector_store %arg3[%c0_5, %c0_6], %5 {strides = array<i32>} : memref<8x128xf32, #tpu.memory_space<vmem>>, vector<8x128xf32>,
    return
  }
}

</mosaic_0001>

<bundles_post_ra>
// kernel: tpu_custom_call.1
= control target key start
LH: loop header
LB: loop body
LE: loop exit
PB: predicated region body
PF: predicated region fallthrough
CT: control target
= control target key end

     0   :  { %8 = vsyncpa [#allocation3], 0  ;;  %s274_s0 = inlined_call_operand.hbm [shape: f32[8,32], index: 0, kind: input, shape index: {}]   ;;  %s275_s1 = inlined_call_operand.hbm [shape: f32[32,128], index: 1, kind: input, shape index: {}]   ;;  %s276_s2 = inlined_call_operand.vmem [shape: f32[1,128], index: 2, kind: input, shape index: {}]   ;;  %s277_s3 = inlined_call_operand.hbm [shape: f32[8,128], index: 3, kind: output, shape index: {}]  }
   0x1   :  { %9 = vsyncpa [#allocation6], 0 }
   0x2   :  { %10 = vsyncpa [#allocation4], 0  ;;  %s235_s12 = smov [#allocation2]   ;;  %s236_s14 = smov [#allocation5]  }
   0x3   :  { %s17_s13 = sshll.u32 %s235_s12, 4  ;;  %s26_s15 = sshll.u32 %s236_s14, 4  ;;  %s18_s13 = int_to_ptr.vmem [resolvable:$true] %s17_s13  ;;  %s27_s15 = int_to_ptr.vmem [resolvable:$true] %s26_s15 }
   0x4   :  { %s177_s16 = scalar_lea.vmem %s18_s13, 128  ;;  %p182_p1 = scmp.lt.s32.totalorder %s18_s13, %s18_s13 }
   0x5   :  { %p178_p0 = scmp.ne.s32.totalorder %s18_s13, %s177_s16  ;;  %p183_p2 = scmp.lt.s32.totalorder %s177_s16, %s177_s16 }
   0x7   :  { %p184_p3 = por %p183_p2, %p182_p1 }
   0x9   :  { %p185_p4 = pnand %p184_p3, %p178_p0 }
   0xb   :  { %188 = shalt.err (!%p185_p4)
}
   0xc   :  { %20 = dma.hbm_to_vmem [thread:$0]  %s274_s0, 128, %s18_s13, [#allocation3]  }
   0xd   :  { %s197_s19 = scalar_lea.vmem %s27_s15, 512  ;;  %p202_p6 = scmp.lt.s32.totalorder %s27_s15, %s27_s15 }
   0xe   :  { %p198_p5 = scmp.ne.s32.totalorder %s27_s15, %s197_s19  ;;  %p203_p7 = scmp.lt.s32.totalorder %s197_s19, %s197_s19 }
  0x10   :  { %p204_p8 = por %p203_p7, %p202_p6 }
  0x12   :  { %p205_p9 = pnand %p204_p8, %p198_p5 }
  0x14   :  { %208 = shalt.err (!%p205_p9)
}
  0x15   :  { %s237_s20 = smov 128   ;;  %s238_s21 = smov 8  }
  0x16   :  { %32 = dma.hbm_to_vmem [thread:$0]  %s275_s1, 512, %s27_s15, [#allocation6], %s237_s20, %s237_s20, %s238_s21  }
  0x17   :  { %229 = dma.done.wait [#allocation3], 128  }
  0x18   :  { %230 = vsyncadd [#allocation3], 4294967168 }
  0x19   :  { %231 = dma.done.wait [#allocation6], 512  }
  0x1a   :  { %232 = vsyncadd [#allocation6], 4294966784  ;;  %v239_v0 = vmov 0.0   ;;  %vm240_vm0 = vmmov 0   ;;  %v45_v1 = vld [vmem:[#allocation5 + $0x18] sm:$0xff]  ;;  %v44_v2 = vld [vmem:[#allocation5 + $0x10] sm:$0xff] }
  0x1b   :  { %151 = vmatprep.subr.mxu0 %v239_v0  ;;  %159 = vmatprep.mubr.msk.f32.mxu0 %vm240_vm0, %v239_v0  ;;  %v43_v3 = vld [vmem:[#allocation5 + $0x8] sm:$0xff]  ;;  %v42_v4 = vld [vmem:[#allocation5] sm:$0xff]  ;;  %v41_v5 = vld [vmem:[#allocation2] sm:$0xff]  ;;  %vm53_vm1 = vcmask 261120   ;;  %s241_s24 = smov [#allocation7]  }
  0x1c   :  { %152 = vmatpush3.msra.mxu0 %v45_v1  ;;  %v144_v6 = vld [vmem:[%s276_s2] ss:$0 sm:$0xff]  ;;  %s134_s25 = sshll.u32 %s241_s24, 4  ;;  %s135_s25 = int_to_ptr.vmem [resolvable:$true] %s134_s25 }
  0x1d   :  { %153 = vmatprep.subr.mxu0 %v239_v0  ;;  %s209_s26 = scalar_lea.vmem %s135_s25, 128  ;;  %p214_p11 = scmp.lt.s32.totalorder %s135_s25, %s135_s25 }
  0x1e   :  { %154 = vmatpush3.msra.mxu0 %v44_v2  ;;  %p210_p10 = scmp.ne.s32.totalorder %s135_s25, %s209_s26  ;;  %p215_p12 = scmp.lt.s32.totalorder %s209_s26, %s209_s26 }
  0x1f   :  { %155 = vmatprep.subr.mxu0 %v239_v0 }
  0x20   :  { %156 = vmatpush3.msra.mxu0 %v43_v3  ;;  %p216_p13 = por %p215_p12, %p214_p11 }
  0x21   :  { %157 = vmatprep.subr.mxu0 %v239_v0 }
  0x22   :  { %158 = vmatpush3.msra.mxu0 %v42_v4  ;;  %p217_p0 = pnand %p216_p13, %p210_p10 }
  0x23   :  { %160 = vmatmul.mubr.msk.f32.vlgmr.msra.gmra.mxu0 %vm53_vm1, %v41_v5 }
  0xe3   :  { %v123_v7 = vpop.f32.mrf.mxu0 }
  0xe4   :  { %v124_v8 = vadd.f32 %v144_v6, %v123_v7 }
  0xe5   :  { %v161_v9 = vpop.f32.mrf.mxu0 }
  0xe6   :  { %127 = vst [vmem:[#allocation7] sm:$0xff] %v124_v8 }
  0xe7   :  { %220 = shalt.err (!%p217_p0)
}
  0xe8   :  { %137 = dma.vmem_to_hbm [thread:$0]  %s135_s25, 128, %s277_s3, [#allocation4]  }
  0xe9   :  { %233 = dma.done.wait [#allocation4], 128  }
  0xea   :  { %234 = vsyncadd [#allocation4], 4294967168 }
  0xeb   :  { %141 = vsyncpa [#allocation3], 1 }
  0xec   :  { %142 = vsyncpa [#allocation6], 1 }
  0xed   :  { %143 = vsyncpa [#allocation4], 1 }

</bundles_post_ra>
